<compile_context>
chip_gen: v5e
topology: v5e:2x2
jax: 0.10.0
libtpu: 0.0.40
codegen_flags: <defaults>
</compile_context>

<pallas_src>
import math

import jax
import jax.numpy as jnp
from jax.experimental import pallas as pl
from jax.experimental.pallas import tpu as pltpu


def mlp_kernel(x_ref, w1_ref, b1_ref, w2_ref, o_ref):
    """Two-layer MLP, batch on the lane axis, output bias folded into weights.

    x_ref : (1, TB)   input tile, batch along lanes (lane-dense)
    w1_ref: (Hp, 1)   layer-1 weight column (VMEM-resident, grid-invariant)
    b1_ref: (Hp, 1)   layer-1 bias column   (row H holds 1.0 for the b2 fold)
    w2_ref: (Hp, 1)   layer-2 weight column (row H holds b2)
    o_ref : (1, TB)   output tile, batch along lanes
    """
    x = x_ref[...]                                   # (1, TB)
    n_groups = w1_ref.shape[0] // 8                  # Hp is a multiple of 8

    # Accumulate the layer-2 sum one 8-row sublane group at a time so the full
    # (Hp, TB) hidden activation never materializes (spill-free single step).
    acc = jnp.zeros(x.shape, jnp.float32)            # (1, TB)
    for g in range(n_groups):                        # static -> fully unrolled
        lo, hi = 8 * g, 8 * (g + 1)
        w1g = w1_ref[lo:hi, :]                       # (8, 1) static slices: views
        b1g = b1_ref[lo:hi, :]
        w2g = w2_ref[lo:hi, :]
        hg = jnp.maximum(w1g * x + b1g, 0.0)         # (8, TB)  pure VPU
        acc = acc + jnp.sum(hg * w2g, axis=0, keepdims=True)  # XLU sublane reduce

    # b2 was folded in as the extra row (relu(0*x + 1) * b2) -> no bias add here.
    o_ref[...] = acc.astype(o_ref.dtype)


def pack_params(w1, b1, w2, b2):
    """Pack the torch-layout params once (call OUTSIDE the hot path).

    torch layout: w1 (H, 1), b1 (H,), w2 (1, H), b2 (1,).
    Returns three (Hp, 1) f32 columns with b2 folded in as one extra hidden
    row (w1=0, b1=1, w2=b2) and Hp = round_up(H + 1, 8).
    """
    H = w1.shape[0]
    assert w1.shape == (H, 1) and b1.shape == (H,)
    assert w2.shape == (1, H) and b2.shape == (1,)
    Hp = ((H + 1 + 7) // 8) * 8
    w1c = jnp.zeros((Hp, 1), jnp.float32).at[:H, 0].set(w1[:, 0])
    b1c = jnp.zeros((Hp, 1), jnp.float32).at[:H, 0].set(b1).at[H, 0].set(1.0)
    w2c = jnp.zeros((Hp, 1), jnp.float32).at[:H, 0].set(w2[0, :]).at[H, 0].set(b2[0])
    return w1c, b1c, w2c


def _default_num_steps():
    """1 grid step on single-TC parts (v5e/v6e); 2 'parallel' steps on dual-TC v7x."""
    try:
        kind = jax.devices()[0].device_kind.lower()
    except Exception:
        return 1
    return 2 if ("v7" in kind or "tpu7" in kind) else 1


def net_forward(x, w1c, b1c, w2c, *, num_steps=None):
    """relu(x @ W1^T + b1) @ W2^T + b2, with params pre-packed by pack_params.

    x: (B, 1) f32.  Returns (B, 1) f32.
    """
    B, F = x.shape
    assert F == 1, "Net in the reference script uses n_feature == 1"
    Hp = w1c.shape[0]

    if num_steps is None:
        num_steps = _default_num_steps()

    # Pad the batch so every tile is a lane-dense multiple of 128 (unmasked stores).
    lane_mult = 128 * num_steps
    Bp = ((B + lane_mult - 1) // lane_mult) * lane_mult
    tile_b = Bp // num_steps

    # Batch -> lane axis.
    x_t = jnp.zeros((1, Bp), x.dtype).at[0, :B].set(x[:, 0])

    y_t = pl.pallas_call(
        mlp_kernel,
        out_shape=jax.ShapeDtypeStruct((1, Bp), x.dtype),
        grid=(num_steps,),
        in_specs=[
            pl.BlockSpec((1, tile_b), lambda i: (0, i)),   # x batch tile
            pl.BlockSpec((Hp, 1), lambda i: (0, 0)),       # weights stay resident
            pl.BlockSpec((Hp, 1), lambda i: (0, 0)),
            pl.BlockSpec((Hp, 1), lambda i: (0, 0)),
        ],
        out_specs=pl.BlockSpec((1, tile_b), lambda i: (0, i)),
        compiler_params=pltpu.CompilerParams(
            dimension_semantics=("parallel",),             # shards the <=2 steps across TCs on v7x
        ),
    )(x_t, w1c, b1c, w2c)

    return y_t[0, :B].reshape(B, 1)


def init_params(key, n_feature, n_hidden, n_output):
    """Deterministic init mimicking torch.nn.Linear default (U(-1/sqrt(fan_in), +))."""
    k1, k2, k3, k4 = jax.random.split(key, 4)
    bound1 = 1.0 / math.sqrt(n_feature)
    bound2 = 1.0 / math.sqrt(n_hidden)
    # PyTorch stores weight as (out, in); keep that convention here.
    w1 = jax.random.uniform(k1, (n_hidden, n_feature), jnp.float32, -bound1, bound1)
    b1 = jax.random.uniform(k2, (n_hidden,), jnp.float32, -bound1, bound1)
    w2 = jax.random.uniform(k3, (n_output, n_hidden), jnp.float32, -bound2, bound2)
    b2 = jax.random.uniform(k4, (n_output,), jnp.float32, -bound2, bound2)
    return w1, b1, w2, b2


if __name__ == "__main__":
    # Shapes consistent with the original script: x = linspace(-pi, pi, 1000)[:, None]
    # (n_feature = 1), small hidden width, scalar regression output.
    batch = 1000
    n_feature, n_hidden, n_output = 1, 32, 1

    key = jax.random.PRNGKey(0)
    w1, b1, w2, b2 = init_params(key, n_feature, n_hidden, n_output)

    # Pack parameters ONCE, outside the forward hot path (perf feedback).
    w1c, b1c, w2c = pack_params(w1, b1, w2, b2)

    x = jnp.expand_dims(
        jnp.linspace(-math.pi, math.pi, batch, dtype=jnp.float32), axis=1
    )  # (batch, 1)

    y = net_forward(x, w1c, b1c, w2c)
    y = jax.block_until_ready(y)

    # Pure-JAX reference in the original (B, F) layout with the original params.
    ref = jnp.maximum(x @ w1.T + b1[None, :], 0.0) @ w2.T + b2[None, :]
    assert y.shape == (batch, n_output)
    assert jnp.allclose(y, ref, atol=1e-5, rtol=1e-5), "mismatch vs reference"

    print("KERNEL_OK")
</pallas_src>

<mosaic_0001>
module attributes {stable_mosaic.version = 11 : i64} {
  func.func @mlp_kernel(%arg0: i32, %arg1: memref<1x1024xf32, #tpu.memory_space<vmem>>, %arg2: memref<40x1xf32, #tpu.memory_space<vmem>>, %arg3: memref<40x1xf32, #tpu.memory_space<vmem>>, %arg4: memref<40x1xf32, #tpu.memory_space<vmem>>, %arg5: memref<1x1024xf32, #tpu.memory_space<vmem>>) attributes {dimension_semantics = [#tpu.dimension_semantics<parallel>], iteration_bounds = array<i64: 1>, scalar_prefetch = 0 : i64, scratch_operands = 0 : i64, tpu.core_type = #tpu.core_type<tc>, window_params = [{transform_indices = @transform_0, window_bounds = array<i64: 1, 1024>}, {pipeline_mode = #tpu.pipeline_mode<synchronous>, transform_indices = @transform_1, window_bounds = array<i64: 40, 1>}, {pipeline_mode = #tpu.pipeline_mode<synchronous>, transform_indices = @transform_2, window_bounds = array<i64: 40, 1>}, {pipeline_mode = #tpu.pipeline_mode<synchronous>, transform_indices = @transform_3, window_bounds = array<i64: 40, 1>}, {transform_indices = @transform_4, window_bounds = array<i64: 1, 1024>}]} {
    %c0 = arith.constant 0 : index
    %c0_0 = arith.constant 0 : index
    %0 = vector.load %arg1[%c0, %c0_0] : memref<1x1024xf32, #tpu.memory_space<vmem>>, vector<1x1024xf32>
    %cst = arith.constant 0.000000e+00 : f32
    %1 = vector.broadcast %cst : f32 to vector<1x1024xf32>
    %c0_1 = arith.constant 0 : index
    %c0_2 = arith.constant 0 : index
    %2 = vector.load %arg2[%c0_1, %c0_2] : memref<40x1xf32, #tpu.memory_space<vmem>>, vector<8x1xf32>
    %c0_3 = arith.constant 0 : index
    %c0_4 = arith.constant 0 : index
    %3 = vector.load %arg3[%c0_3, %c0_4] : memref<40x1xf32, #tpu.memory_space<vmem>>, vector<8x1xf32>
    %c0_5 = arith.constant 0 : index
    %c0_6 = arith.constant 0 : index
    %4 = vector.load %arg4[%c0_5, %c0_6] : memref<40x1xf32, #tpu.memory_space<vmem>>, vector<8x1xf32>
    %5 = vector.broadcast %2 : vector<8x1xf32> to vector<8x1024xf32>
    %6 = vector.broadcast %0 : vector<1x1024xf32> to vector<8x1024xf32>
    %7 = arith.mulf %5, %6 : vector<8x1024xf32>
    %8 = vector.broadcast %3 : vector<8x1xf32> to vector<8x1024xf32>
    %9 = arith.addf %7, %8 : vector<8x1024xf32>
    %cst_7 = arith.constant 0.000000e+00 : f32
    %10 = vector.broadcast %cst_7 : f32 to vector<8x1024xf32>
    %11 = arith.maximumf %9, %10 : vector<8x1024xf32>
    %12 = vector.broadcast %4 : vector<8x1xf32> to vector<8x1024xf32>
    %13 = arith.mulf %11, %12 : vector<8x1024xf32>
    %cst_8 = arith.constant dense<0.000000e+00> : vector<1024xf32>
    %14 = vector.multi_reduction <add>, %13, %cst_8 [0] : vector<8x1024xf32> to vector<1024xf32>
    %15 = vector.shape_cast %14 : vector<1024xf32> to vector<1x1024xf32>
    %16 = arith.addf %1, %15 : vector<1x1024xf32>
    %c8 = arith.constant 8 : index
    %c0_9 = arith.constant 0 : index
    %17 = vector.load %arg2[%c8, %c0_9] : memref<40x1xf32, #tpu.memory_space<vmem>>, vector<8x1xf32>
    %c8_10 = arith.constant 8 : index
    %c0_11 = arith.constant 0 : index
    %18 = vector.load %arg3[%c8_10, %c0_11] : memref<40x1xf32, #tpu.memory_space<vmem>>, vector<8x1xf32>
    %c8_12 = arith.constant 8 : index
    %c0_13 = arith.constant 0 : index
    %19 = vector.load %arg4[%c8_12, %c0_13] : memref<40x1xf32, #tpu.memory_space<vmem>>, vector<8x1xf32>
    %20 = vector.broadcast %17 : vector<8x1xf32> to vector<8x1024xf32>
    %21 = vector.broadcast %0 : vector<1x1024xf32> to vector<8x1024xf32>
    %22 = arith.mulf %20, %21 : vector<8x1024xf32>
    %23 = vector.broadcast %18 : vector<8x1xf32> to vector<8x1024xf32>
    %24 = arith.addf %22, %23 : vector<8x1024xf32>
    %cst_14 = arith.constant 0.000000e+00 : f32
    %25 = vector.broadcast %cst_14 : f32 to vector<8x1024xf32>
    %26 = arith.maximumf %24, %25 : vector<8x1024xf32>
    %27 = vector.broadcast %19 : vector<8x1xf32> to vector<8x1024xf32>
    %28 = arith.mulf %26, %27 : vector<8x1024xf32>
    %cst_15 = arith.constant dense<0.000000e+00> : vector<1024xf32>
    %29 = vector.multi_reduction <add>, %28, %cst_15 [0] : vector<8x1024xf32> to vector<1024xf32>
    %30 = vector.shape_cast %29 : vector<1024xf32> to vector<1x1024xf32>
    %31 = arith.addf %16, %30 : vector<1x1024xf32>
    %c16 = arith.constant 16 : index
    %c0_16 = arith.constant 0 : index
    %32 = vector.load %arg2[%c16, %c0_16] : memref<40x1xf32, #tpu.memory_space<vmem>>, vector<8x1xf32>
    %c16_17 = arith.constant 16 : index
    %c0_18 = arith.constant 0 : index
    %33 = vector.load %arg3[%c16_17, %c0_18] : memref<40x1xf32, #tpu.memory_space<vmem>>, vector<8x1xf32>
    %c16_19 = arith.constant 16 : index
    %c0_20 = arith.constant 0 : index
    %34 = vector.load %arg4[%c16_19, %c0_20] : memref<40x1xf32, #tpu.memory_space<vmem>>, vector<8x1xf32>
    %35 = vector.broadcast %32 : vector<8x1xf32> to vector<8x1024xf32>
    %36 = vector.broadcast %0 : vector<1x1024xf32> to vector<8x1024xf32>
    %37 = arith.mulf %35, %36 : vector<8x1024xf32>
    %38 = vector.broadcast %33 : vector<8x1xf32> to vector<8x1024xf32>
    %39 = arith.addf %37, %38 : vector<8x1024xf32>
    %cst_21 = arith.constant 0.000000e+00 : f32
    %40 = vector.broadcast %cst_21 : f32 to vector<8x1024xf32>
    %41 = arith.maximumf %39, %40 : vector<8x1024xf32>
    %42 = vector.broadcast %34 : vector<8x1xf32> to vector<8x1024xf32>
    %43 = arith.mulf %41, %42 : vector<8x1024xf32>
    %cst_22 = arith.constant dense<0.000000e+00> : vector<1024xf32>
    %44 = vector.multi_reduction <add>, %43, %cst_22 [0] : vector<8x1024xf32> to vector<1024xf32>
    %45 = vector.shape_cast %44 : vector<1024xf32> to vector<1x1024xf32>
    %46 = arith.addf %31, %45 : vector<1x1024xf32>
    %c24 = arith.constant 24 : index
    %c0_23 = arith.constant 0 : index
    %47 = vector.load %arg2[%c24, %c0_23] : memref<40x1xf32, #tpu.memory_space<vmem>>, vector<8x1xf32>
    %c24_24 = arith.constant 24 : index
    %c0_25 = arith.constant 0 : index
    %48 = vector.load %arg3[%c24_24, %c0_25] : memref<40x1xf32, #tpu.memory_space<vmem>>, vector<8x1xf32>
    %c24_26 = arith.constant 24 : index
    %c0_27 = arith.constant 0 : index
    %49 = vector.load %arg4[%c24_26, %c0_27] : memref<40x1xf32, #tpu.memory_space<vmem>>, vector<8x1xf32>
    %50 = vector.broadcast %47 : vector<8x1xf32> to vector<8x1024xf32>
    %51 = vector.broadcast %0 : vector<1x1024xf32> to vector<8x1024xf32>
    %52 = arith.mulf %50, %51 : vector<8x1024xf32>
    %53 = vector.broadcast %48 : vector<8x1xf32> to vector<8x1024xf32>
    %54 = arith.addf %52, %53 : vector<8x1024xf32>
    %cst_28 = arith.constant 0.000000e+00 : f32
    %55 = vector.broadcast %cst_28 : f32 to vector<8x1024xf32>
    %56 = arith.maximumf %54, %55 : vector<8x1024xf32>
    %57 = vector.broadcast %49 : vector<8x1xf32> to vector<8x1024xf32>
    %58 = arith.mulf %56, %57 : vector<8x1024xf32>
    %cst_29 = arith.constant dense<0.000000e+00> : vector<1024xf32>
    %59 = vector.multi_reduction <add>, %58, %cst_29 [0] : vector<8x1024xf32> to vector<1024xf32>
    %60 = vector.shape_cast %59 : vector<1024xf32> to vector<1x1024xf32>
    %61 = arith.addf %46, %60 : vector<1x1024xf32>
    %c32 = arith.constant 32 : index
    %c0_30 = arith.constant 0 : index
    %62 = vector.load %arg2[%c32, %c0_30] : memref<40x1xf32, #tpu.memory_space<vmem>>, vector<8x1xf32>
    %c32_31 = arith.constant 32 : index
    %c0_32 = arith.constant 0 : index
    %63 = vector.load %arg3[%c32_31, %c0_32] : memref<40x1xf32, #tpu.memory_space<vmem>>, vector<8x1xf32>
    %c32_33 = arith.constant 32 : index
    %c0_34 = arith.constant 0 : index
    %64 = vector.load %arg4[%c32_33, %c0_34] : memref<40x1xf32, #tpu.memory_space<vmem>>, vector<8x1xf32>
    %65 = vector.broadcast %62 : vector<8x1xf32> to vector<8x1024xf32>
    %66 = vector.broadcast %0 : vector<1x1024xf32> to vector<8x1024xf32>
    %67 = arith.mulf %65, %66 : vector<8x1024xf32>
    %68 = vector.broadcast %63 : vector<8x1xf32> to vector<8x1024xf32>
    %69 = arith.addf %67, %68 : vector<8x1024xf32>
    %cst_35 = arith.constant 0.000000e+00 : f32
    %70 = vector.broadcast %cst_35 : f32 to vector<8x1024xf32>
    %71 = arith.maximumf %69, %70 : vector<8x1024xf32>
    %72 = vector.broadcast %64 : vector<8x1xf32> to vector<8x1024xf32>
    %73 = arith.mulf %71, %72 : vector<8x1024xf32>
    %cst_36 = arith.constant dense<0.000000e+00> : vector<1024xf32>
    %74 = vector.multi_reduction <add>, %73, %cst_36 [0] : vector<8x1024xf32> to vector<1024xf32>
    %75 = vector.shape_cast %74 : vector<1024xf32> to vector<1x1024xf32>
    %76 = arith.addf %61, %75 : vector<1x1024xf32>
    %c0_37 = arith.constant 0 : index
    %c0_38 = arith.constant 0 : index
    %77 = vector.load %arg5[%c0_37, %c0_38] : memref<1x1024xf32, #tpu.memory_space<vmem>>, vector<1x1024xf32>
    tpu.vector_store %arg5[%c0_37, %c0_38], %76 {strides = array<i32>} : memref<1x1024xf32, #tpu.memory_space<vmem>>, vector<1x1024xf32>,
    return
  }
  func.func @transform_0(%arg0: i32) -> (i32, i32) {
    %c0_i32 = arith.constant 0 : i32
    %c0_i32_0 = arith.constant 0 : i32
    return %c0_i32, %arg0 : i32, i32
  }
  func.func @transform_1(%arg0: i32) -> (i32, i32) {
    %c0_i32 = arith.constant 0 : i32
    %c0_i32_0 = arith.constant 0 : i32
    %c0_i32_1 = arith.constant 0 : i32
    return %c0_i32, %c0_i32_0 : i32, i32
  }
  func.func @transform_2(%arg0: i32) -> (i32, i32) {
    %c0_i32 = arith.constant 0 : i32
    %c0_i32_0 = arith.constant 0 : i32
    %c0_i32_1 = arith.constant 0 : i32
    return %c0_i32, %c0_i32_0 : i32, i32
  }
  func.func @transform_3(%arg0: i32) -> (i32, i32) {
    %c0_i32 = arith.constant 0 : i32
    %c0_i32_0 = arith.constant 0 : i32
    %c0_i32_1 = arith.constant 0 : i32
    return %c0_i32, %c0_i32_0 : i32, i32
  }
  func.func @transform_4(%arg0: i32) -> (i32, i32) {
    %c0_i32 = arith.constant 0 : i32
    %c0_i32_0 = arith.constant 0 : i32
    return %c0_i32, %arg0 : i32, i32
  }
}

</mosaic_0001>

<bundles_post_ra>
// kernel: tpu_custom_call.1
= control target key start
LH: loop header
LB: loop body
LE: loop exit
PB: predicated region body
PF: predicated region fallthrough
CT: control target
= control target key end

     0   :  { %v644_v3 = vmov 0   ;;  %s1046_s0 = inlined_call_operand.vmem [shape: f32[1,1024], index: 0, kind: input, shape index: {}]   ;;  %s1047_s1 = inlined_call_operand.vmem [shape: f32[40,1], index: 1, kind: input, shape index: {}]   ;;  %s1048_s2 = inlined_call_operand.vmem [shape: f32[40,1], index: 2, kind: input, shape index: {}]   ;;  %s1049_s3 = inlined_call_operand.vmem [shape: f32[40,1], index: 3, kind: input, shape index: {}]   ;;  %s1050_s4 = inlined_call_operand.hbm [shape: f32[1,1024], index: 4, kind: output, shape index: {}]  }
   0x1   :  { %v143_v0 = vld [vmem:[%s1048_s2 + $0x8] sm:$0xff]  ;;  %v21_v1 = vld [vmem:[%s1049_s3] sm:$0xff]  ;;  %617 = vset.pattern.permute.xlu2 %v644_v3  ;;  %616 = vset.pattern.permute.xlu1 %v644_v3 }
   0x2   :  { %v19_v2 = vld [vmem:[%s1047_s1] sm:$0xff]  ;;  %615 = vset.pattern.permute.xlu0 %v644_v3  ;;  %160 = vperm.xlu2 %617, %v143_v0  }
   0x3   :  { %75 = vperm.xlu1 %616, %v21_v1   ;;  %24 = vperm.xlu0 %615, %v19_v2  }
   0x4   :  { %9 = vsyncpa [#allocation3], 0  ;;  %v248_v4 = vld [vmem:[%s1047_s1 + $0x10] sm:$0xff]  ;;  %v142_v5 = vld [vmem:[%s1047_s1 + $0x8] sm:$0xff]  ;;  %vm581_vm0 = vcmask 1040384   ;;  %vm583_vm1 = vcmask 1042434  }
   0x5   :  { %v20_v6 = vld [vmem:[%s1048_s2] sm:$0xff]  ;;  %v144_v7 = vld [vmem:[%s1049_s3 + $0x8] sm:$0xff]  ;;  %v354_v8 = vld [vmem:[%s1047_s1 + $0x18] sm:$0xff]  ;;  %vm585_vm2 = vcmask 1041408   ;;  %vm587_vm3 = vcmask 1044484   ;;  %s604_s21 = sshll.u32 %s1050_s4, 4  ;;  %s605_s21 = int_to_ptr.hbm [resolvable:$true] %s604_s21 }
   0x6   :  { %v249_v9 = vld [vmem:[%s1048_s2 + $0x10] sm:$0xff]  ;;  %v460_v11 = vld [vmem:[%s1047_s1 + $0x20] sm:$0xff]  ;;  %v355_v12 = vld [vmem:[%s1048_s2 + $0x18] sm:$0xff]  ;;  %vm589_vm4 = vcmask 1046534   ;;  %vm591_vm5 = vcmask 1045508   ;;  %vm593_vm6 = vcmask 1043456  }
   0x7   :  { %v250_v10 = vld [vmem:[%s1049_s3 + $0x10] sm:$0xff]  ;;  %v462_v13 = vld [vmem:[%s1049_s3 + $0x20] sm:$0xff]  ;;  %v356_v14 = vld [vmem:[%s1049_s3 + $0x18] sm:$0xff] }
   0x8   :  { %v461_v15 = vld [vmem:[%s1048_s2 + $0x20] sm:$0xff] }
   0x9   :  { %v18_v17 = vld [vmem:[%s1046_s0] sm:$0xff]  ;;  %s645_s0 = smov [#allocation2]  }
   0xa   :  { %253 = vperm.xlu2 %617, %v248_v4   ;;  %v721_v19 = vperm.slane %v18_v17, 0  ;;  %v723_v20 = vperm.slane %v18_v17, 1  ;;  %v725_v21 = vperm.slane %v18_v17, 2  ;;  %v727_v22 = vperm.slane %v18_v17, 3  ;;  %s602_s2 = sshll.u32 %s645_s0, 4  ;;  %s603_s2 = int_to_ptr.vmem [resolvable:$true] %s602_s2 }
   0xb   :  { %147 = vperm.xlu1 %616, %v142_v5   ;;  %54 = vperm.xlu0 %615, %v20_v6   ;;  %v729_v24 = vperm.slane %v18_v17, 4  ;;  %v731_v25 = vperm.slane %v18_v17, 5  ;;  %v733_v26 = vperm.slane %v18_v17, 6  ;;  %v735_v27 = vperm.slane %v18_v17, 7 }
  0x12   :  { %181 = vperm.xlu2 %617, %v144_v7  }
  0x13   :  { %359 = vperm.xlu1 %616, %v354_v8   ;;  %266 = vperm.xlu0 %615, %v249_v9  }
  0x1a   :  { %287 = vperm.xlu2 %617, %v250_v10  }
  0x1b   :  { %465 = vperm.xlu1 %616, %v460_v11   ;;  %372 = vperm.xlu0 %615, %v355_v12  }
  0x22   :  { %499 = vperm.xlu2 %617, %v462_v13  }
  0x23   :  { %393 = vperm.xlu1 %616, %v356_v14   ;;  %478 = vperm.xlu0 %615, %v461_v15  }
  0x5c   :  { %v161_v16 = vpop.permute.xlu2 %160 }
  0x64   :  { %v254_v23 = vpop.permute.xlu2 %253 }
  0x65   :  { %v738_v29 = vmul.f32 %v254_v23, %v721_v19  ;;  %v741_v30 = vmul.f32 %v254_v23, %v723_v20  ;;  %v744_v31 = vmul.f32 %v254_v23, %v725_v21  ;;  %v747_v32 = vmul.f32 %v254_v23, %v727_v22 }
  0x66   :  { %v750_v33 = vmul.f32 %v254_v23, %v729_v24  ;;  %v753_v34 = vmul.f32 %v254_v23, %v731_v25  ;;  %v756_v35 = vmul.f32 %v254_v23, %v733_v26  ;;  %v759_v36 = vmul.f32 %v254_v23, %v735_v27 }
  0x6c   :  { %v182_v2 = vpop.permute.xlu2 %181 }
  0x75   :  { %v719_v18 = vpop.permute.xlu1 %75  ;;  %v25_v28 = vpop.permute.xlu0 %24 }
  0x76   :  { %v44_v37 = vmul.f32 %v721_v19, %v25_v28  ;;  %v45_v38 = vmul.f32 %v723_v20, %v25_v28  ;;  %v46_v39 = vmul.f32 %v725_v21, %v25_v28  ;;  %v47_v40 = vmul.f32 %v727_v22, %v25_v28 }
  0x77   :  { %v48_v41 = vmul.f32 %v729_v24, %v25_v28  ;;  %v49_v42 = vmul.f32 %v731_v25, %v25_v28  ;;  %v50_v43 = vmul.f32 %v733_v26, %v25_v28  ;;  %v51_v44 = vmul.f32 %v735_v27, %v25_v28 }
  0x7d   :  { %v148_v45 = vpop.permute.xlu1 %147  ;;  %v55_v15 = vpop.permute.xlu0 %54 }
  0x7e   :  { %v150_v46 = vmul.f32 %v148_v45, %v721_v19  ;;  %v151_v47 = vmul.f32 %v148_v45, %v723_v20  ;;  %v152_v48 = vmul.f32 %v148_v45, %v725_v21  ;;  %v153_v49 = vmul.f32 %v148_v45, %v727_v22 }
  0x7f   :  { %v154_v50 = vmul.f32 %v148_v45, %v729_v24  ;;  %v155_v51 = vmul.f32 %v148_v45, %v731_v25  ;;  %v156_v52 = vmul.f32 %v148_v45, %v733_v26  ;;  %v157_v53 = vmul.f32 %v148_v45, %v735_v27 }
  0x80   :  { %v163_v54 = vadd.f32 %v161_v16, %v150_v46  ;;  %v164_v55 = vadd.f32 %v161_v16, %v151_v47  ;;  %v165_v56 = vadd.f32 %v161_v16, %v152_v48  ;;  %v166_v57 = vadd.f32 %v161_v16, %v153_v49 }
  0x81   :  { %v167_v58 = vadd.f32 %v161_v16, %v154_v50  ;;  %v168_v59 = vadd.f32 %v161_v16, %v155_v51  ;;  %v169_v60 = vadd.f32 %v161_v16, %v156_v52  ;;  %v170_v61 = vadd.f32 %v161_v16, %v157_v53 }
  0x82   :  { %v171_v62 = vmax.f32 %v163_v54, 0.0  ;;  %v172_v63 = vmax.f32 %v164_v55, 0.0  ;;  %v173_v0 = vmax.f32 %v165_v56, 0.0  ;;  %v174_v1 = vmax.f32 %v166_v57, 0.0 }
  0x83   :  { %v175_v3 = vmax.f32 %v167_v58, 0.0  ;;  %v176_v4 = vmax.f32 %v168_v59, 0.0  ;;  %v177_v5 = vmax.f32 %v169_v60, 0.0  ;;  %v178_v6 = vmax.f32 %v170_v61, 0.0 }
  0x84   :  { %v777_v7 = vmul.f32 %v182_v2, %v171_v62  ;;  %v779_v8 = vmul.f32 %v182_v2, %v172_v63  ;;  %v781_v9 = vmul.f32 %v182_v2, %v173_v0  ;;  %v783_v10 = vmul.f32 %v182_v2, %v174_v1 }
  0x85   :  { %v785_v11 = vmul.f32 %v182_v2, %v175_v3  ;;  %v787_v12 = vmul.f32 %v182_v2, %v176_v4  ;;  %v789_v13 = vmul.f32 %v182_v2, %v177_v5  ;;  %v791_v14 = vmul.f32 %v182_v2, %v178_v6  ;;  %v360_v57 = vpop.permute.xlu1 %359 }
  0x86   :  { %v192_v16 = vrot.slane %v777_v7, 4  ;;  %v57_v49 = vadd.f32 %v55_v15, %v44_v37  ;;  %v58_v50 = vadd.f32 %v55_v15, %v45_v38  ;;  %v59_v51 = vadd.f32 %v55_v15, %v46_v39 }
  0x87   :  { %v60_v52 = vadd.f32 %v55_v15, %v47_v40  ;;  %v61_v53 = vadd.f32 %v55_v15, %v48_v41  ;;  %v62_v54 = vadd.f32 %v55_v15, %v49_v42  ;;  %v63_v55 = vadd.f32 %v55_v15, %v50_v43 }
  0x88   :  { %v64_v56 = vadd.f32 %v55_v15, %v51_v44  ;;  %v65_v58 = vmax.f32 %v57_v49, 0.0  ;;  %v66_v59 = vmax.f32 %v58_v50, 0.0  ;;  %v67_v60 = vmax.f32 %v59_v51, 0.0  ;;  %v267_v51 = vpop.permute.xlu0 %266 }
  0x89   :  { %v68_v61 = vmax.f32 %v60_v52, 0.0  ;;  %v69_v62 = vmax.f32 %v61_v53, 0.0  ;;  %v70_v63 = vmax.f32 %v62_v54, 0.0  ;;  %v71_v0 = vmax.f32 %v63_v55, 0.0 }
  0x8a   :  { %v72_v1 = vmax.f32 %v64_v56, 0.0  ;;  %v78_v2 = vmul.f32 %v719_v18, %v65_v58  ;;  %v79_v37 = vmul.f32 %v719_v18, %v66_v59  ;;  %v80_v38 = vmul.f32 %v719_v18, %v67_v60 }
  0x8b   :  { %v81_v39 = vmul.f32 %v719_v18, %v68_v61  ;;  %v82_v40 = vmul.f32 %v719_v18, %v69_v62  ;;  %v83_v41 = vmul.f32 %v719_v18, %v70_v63  ;;  %v84_v42 = vmul.f32 %v719_v18, %v71_v0 }
  0x8c   :  { %v85_v43 = vmul.f32 %v719_v18, %v72_v1  ;;  %v86_v44 = vrot.slane %v78_v2, 4  ;;  %v92_v3 = vrot.slane %v79_v37, 4  ;;  %v98_v4 = vrot.slane %v80_v38, 4 }
  0x8d   :  { %v104_v5 = vrot.slane %v81_v39, 4  ;;  %v110_v6 = vrot.slane %v82_v40, 4  ;;  %v116_v15 = vrot.slane %v83_v41, 4  ;;  %v122_v49 = vrot.slane %v84_v42, 4 }
  0x8e   :  { %v128_v50 = vrot.slane %v85_v43, 4  ;;  %v809_v52 = vadd.f32 %v86_v44, %v78_v2  ;;  %v811_v53 = vadd.f32 %v92_v3, %v79_v37  ;;  %v813_v54 = vadd.f32 %v98_v4, %v80_v38  ;;  %v833_v38 = vpop.permute.xlu1 %465 }
  0x8f   :  { %v815_v55 = vadd.f32 %v104_v5, %v81_v39  ;;  %v817_v56 = vadd.f32 %v110_v6, %v82_v40  ;;  %v819_v18 = vadd.f32 %v116_v15, %v83_v41  ;;  %v821_v58 = vadd.f32 %v122_v49, %v84_v42  ;;  %v288_v49 = vpop.permute.xlu2 %287 }
  0x90   :  { %v823_v59 = vadd.f32 %v128_v50, %v85_v43  ;;  %v362_v60 = vmul.f32 %v360_v57, %v721_v19  ;;  %v363_v61 = vmul.f32 %v360_v57, %v723_v20  ;;  %v364_v62 = vmul.f32 %v360_v57, %v725_v21 }
  0x91   :  { %v365_v63 = vmul.f32 %v360_v57, %v727_v22  ;;  %v366_v0 = vmul.f32 %v360_v57, %v729_v24  ;;  %v367_v1 = vmul.f32 %v360_v57, %v731_v25  ;;  %v368_v2 = vmul.f32 %v360_v57, %v733_v26 }
  0x92   :  { %v369_v37 = vmul.f32 %v360_v57, %v735_v27  ;;  %v269_v39 = vadd.f32 %v267_v51, %v738_v29  ;;  %v270_v40 = vadd.f32 %v267_v51, %v741_v30  ;;  %v271_v41 = vadd.f32 %v267_v51, %v744_v31 }
  0x93   :  { %v272_v42 = vadd.f32 %v267_v51, %v747_v32  ;;  %v273_v43 = vadd.f32 %v267_v51, %v750_v33  ;;  %v274_v44 = vadd.f32 %v267_v51, %v753_v34  ;;  %v275_v3 = vadd.f32 %v267_v51, %v756_v35 }
  0x94   :  { %v276_v4 = vadd.f32 %v267_v51, %v759_v36  ;;  %v277_v5 = vmax.f32 %v269_v39, 0.0  ;;  %v278_v57 = vmax.f32 %v270_v40, 0.0  ;;  %v279_v6 = vmax.f32 %v271_v41, 0.0  ;;  %v373_v40 = vpop.permute.xlu0 %372 }
  0x95   :  { %v280_v15 = vmax.f32 %v272_v42, 0.0  ;;  %v281_v29 = vmax.f32 %v273_v43, 0.0  ;;  %v282_v50 = vmax.f32 %v274_v44, 0.0  ;;  %v283_v30 = vmax.f32 %v275_v3, 0.0 }
  0x96   :  { %v284_v48 = vmax.f32 %v276_v4, 0.0  ;;  %v843_v31 = vmul.f32 %v288_v49, %v277_v5  ;;  %v845_v32 = vmul.f32 %v288_v49, %v278_v57  ;;  %v847_v33 = vmul.f32 %v288_v49, %v279_v6 }
  0x97   :  { %v849_v34 = vmul.f32 %v288_v49, %v280_v15  ;;  %v851_v35 = vmul.f32 %v288_v49, %v281_v29  ;;  %v853_v36 = vmul.f32 %v288_v49, %v282_v50  ;;  %v855_v51 = vmul.f32 %v288_v49, %v283_v30  ;;  %v394_v29 = vpop.permute.xlu1 %393 }
  0x98   :  { %v857_v39 = vmul.f32 %v288_v49, %v284_v48  ;;  %v375_v6 = vadd.f32 %v373_v40, %v362_v60  ;;  %v376_v48 = vadd.f32 %v373_v40, %v363_v61  ;;  %v377_v15 = vadd.f32 %v373_v40, %v364_v62 }
  0x99   :  { %v378_v49 = vadd.f32 %v373_v40, %v365_v63  ;;  %v379_v50 = vadd.f32 %v373_v40, %v366_v0  ;;  %v380_v30 = vadd.f32 %v373_v40, %v367_v1  ;;  %v381_v42 = vadd.f32 %v373_v40, %v368_v2 }
  0x9a   :  { %v382_v41 = vadd.f32 %v373_v40, %v369_v37  ;;  %v383_v43 = vmax.f32 %v375_v6, 0.0  ;;  %v384_v47 = vmax.f32 %v376_v48, 0.0  ;;  %v385_v44 = vmax.f32 %v377_v15, 0.0 }
  0x9b   :  { %v386_v46 = vmax.f32 %v378_v49, 0.0  ;;  %v387_v3 = vmax.f32 %v379_v50, 0.0  ;;  %v388_v45 = vmax.f32 %v380_v30, 0.0  ;;  %v389_v4 = vmax.f32 %v381_v42, 0.0 }
  0x9c   :  { %v390_v28 = vmax.f32 %v382_v41, 0.0  ;;  %v396_v5 = vmul.f32 %v394_v29, %v383_v43  ;;  %v397_v23 = vmul.f32 %v394_v29, %v384_v47  ;;  %v398_v57 = vmul.f32 %v394_v29, %v385_v44  ;;  %v479_v30 = vpop.permute.xlu0 %478 }
  0x9d   :  { %v399_v60 = vmul.f32 %v394_v29, %v386_v46  ;;  %v400_v61 = vmul.f32 %v394_v29, %v387_v3  ;;  %v401_v62 = vmul.f32 %v394_v29, %v388_v45  ;;  %v402_v63 = vmul.f32 %v394_v29, %v389_v4 }
  0x9e   :  { %v403_v17 = vmul.f32 %v394_v29, %v390_v28  ;;  %v404_v0 = vrot.slane %v396_v5, 4  ;;  %v410_v1 = vrot.slane %v397_v23, 4  ;;  %v416_v2 = vrot.slane %v398_v57, 4 }
  0x9f   :  { %v422_v37 = vrot.slane %v399_v60, 4  ;;  %v428_v40 = vrot.slane %v400_v61, 4  ;;  %v434_v6 = vrot.slane %v401_v62, 4  ;;  %v440_v48 = vrot.slane %v402_v63, 4 }
  0xa0   :  { %v446_v15 = vrot.slane %v403_v17, 4  ;;  %v867_v49 = vadd.f32 %v404_v0, %v396_v5  ;;  %v869_v42 = vadd.f32 %v410_v1, %v397_v23  ;;  %v871_v41 = vadd.f32 %v416_v2, %v398_v57  ;;  %v500_v57 = vpop.permute.xlu2 %499 }
  0xa1   :  { %v873_v47 = vadd.f32 %v422_v37, %v399_v60  ;;  %v875_v46 = vadd.f32 %v428_v40, %v400_v61  ;;  %v877_v45 = vadd.f32 %v434_v6, %v401_v62  ;;  %v879_v28 = vadd.f32 %v440_v48, %v402_v63 }
  0xa2   :  { %v881_v43 = vadd.f32 %v446_v15, %v403_v17  ;;  %v468_v17 = vmul.f32 %v833_v38, %v721_v19  ;;  %v469_v60 = vmul.f32 %v833_v38, %v723_v20  ;;  %v470_v61 = vmul.f32 %v833_v38, %v725_v21 }
  0xa3   :  { %v471_v62 = vmul.f32 %v833_v38, %v727_v22  ;;  %v472_v63 = vmul.f32 %v833_v38, %v729_v24  ;;  %v473_v0 = vmul.f32 %v833_v38, %v731_v25  ;;  %v474_v1 = vmul.f32 %v833_v38, %v733_v26 }
  0xa4   :  { %v475_v19 = vmul.f32 %v833_v38, %v735_v27  ;;  %v481_v2 = vadd.f32 %v479_v30, %v468_v17  ;;  %v482_v20 = vadd.f32 %v479_v30, %v469_v60  ;;  %v483_v37 = vadd.f32 %v479_v30, %v470_v61 }
  0xa5   :  { %v484_v40 = vadd.f32 %v479_v30, %v471_v62  ;;  %v485_v21 = vadd.f32 %v479_v30, %v472_v63  ;;  %v486_v6 = vadd.f32 %v479_v30, %v473_v0  ;;  %v487_v48 = vadd.f32 %v479_v30, %v474_v1 }
  0xa6   :  { %v488_v22 = vadd.f32 %v479_v30, %v475_v19  ;;  %v489_v15 = vmax.f32 %v481_v2, 0.0  ;;  %v490_v50 = vmax.f32 %v482_v20, 0.0  ;;  %v491_v24 = vmax.f32 %v483_v37, 0.0 }
  0xa7   :  { %v492_v29 = vmax.f32 %v484_v40, 0.0  ;;  %v493_v25 = vmax.f32 %v485_v21, 0.0  ;;  %v494_v5 = vmax.f32 %v486_v6, 0.0  ;;  %v495_v23 = vmax.f32 %v487_v48, 0.0 }
  0xa8   :  { %v496_v26 = vmax.f32 %v488_v22, 0.0  ;;  %v907_v4 = vmul.f32 %v500_v57, %v489_v15  ;;  %v909_v27 = vmul.f32 %v500_v57, %v490_v50  ;;  %v911_v38 = vmul.f32 %v500_v57, %v491_v24 }
  0xa9   :  { %v913_v17 = vmul.f32 %v500_v57, %v492_v29  ;;  %v915_v60 = vmul.f32 %v500_v57, %v493_v25  ;;  %v917_v30 = vmul.f32 %v500_v57, %v494_v5  ;;  %v919_v61 = vmul.f32 %v500_v57, %v495_v23 }
  0xaa   :  { %v921_v62 = vmul.f32 %v500_v57, %v496_v26  ;;  %v88_v23 = vrot.slane %v809_v52, 2  ;;  %v94_v57 = vrot.slane %v811_v53, 2  ;;  %v100_v20 = vrot.slane %v813_v54, 2 }
  0xab   :  { %1059 = vst [vmem:[#allocation5_spill] sm:$0xff] %v915_v60  ;;  %v106_v37 = vrot.slane %v815_v55, 2  ;;  %v112_v40 = vrot.slane %v817_v56, 2  ;;  %v118_v21 = vrot.slane %v819_v18, 2  ;;  %v124_v6 = vrot.slane %v821_v58, 2 }
  0xac   :  { %1060 = vst [vmem:[#allocation6_spill] sm:$0xff] %v917_v30  ;;  %v130_v48 = vrot.slane %v823_v59, 2  ;;  %v89_v22 = vadd.f32 %v88_v23, %v809_v52  ;;  %v95_v15 = vadd.f32 %v94_v57, %v811_v53  ;;  %v101_v24 = vadd.f32 %v100_v20, %v813_v54 }
  0xad   :  { %1061 = vst [vmem:[#allocation7_spill] sm:$0xff] %v919_v61  ;;  %v107_v25 = vadd.f32 %v106_v37, %v815_v55  ;;  %v113_v26 = vadd.f32 %v112_v40, %v817_v56  ;;  %v119_v5 = vadd.f32 %v118_v21, %v819_v18  ;;  %v125_v2 = vadd.f32 %v124_v6, %v821_v58 }
  0xae   :  { %1062 = vst [vmem:[#allocation8_spill] sm:$0xff] %v921_v62  ;;  %v131_v29 = vadd.f32 %v130_v48, %v823_v59  ;;  %v90_v19 = vrot.slane %v89_v22, 1  ;;  %v96_v50 = vrot.slane %v95_v15, 1  ;;  %v102_v1 = vrot.slane %v101_v24, 1 }
  0xaf   :  { %v108_v0 = vrot.slane %v107_v25, 1  ;;  %v114_v63 = vrot.slane %v113_v26, 1  ;;  %v120_v52 = vrot.slane %v119_v5, 1  ;;  %v126_v23 = vrot.slane %v125_v2, 1 }
  0xb0   :  { %v132_v53 = vrot.slane %v131_v29, 1  ;;  %v91_v57 = vadd.f32 %v90_v19, %v89_v22  ;;  %v97_v54 = vadd.f32 %v96_v50, %v95_v15  ;;  %v103_v20 = vadd.f32 %v102_v1, %v101_v24 }
  0xb1   :  { %v109_v55 = vadd.f32 %v108_v0, %v107_v25  ;;  %v115_v37 = vadd.f32 %v114_v63, %v113_v26  ;;  %v121_v56 = vadd.f32 %v120_v52, %v119_v5  ;;  %v127_v40 = vadd.f32 %v126_v23, %v125_v2 }
  0xb2   :  { %v133_v18 = vadd.f32 %v132_v53, %v131_v29  ;;  %v193_v58 = vadd.f32 %v192_v16, %v777_v7  ;;  %v1063_v59 = vrot.slane %v779_v8, 4  ;;  %v1064_v6 = vrot.slane %v781_v9, 4 }
  0xb3   :  { %v1065_v1 = vrot.slane %v783_v10, 4  ;;  %v1066_v63 = vrot.slane %v785_v11, 4  ;;  %v1067_v19 = vrot.slane %v787_v12, 4  ;;  %v1068_v16 = vrot.slane %v789_v13, 4 }
  0xb4   :  { %v199_v21 = vadd.f32 %v1063_v59, %v779_v8  ;;  %v205_v48 = vadd.f32 %v1064_v6, %v781_v9  ;;  %v1069_v29 = vrot.slane %v791_v14, 4  ;;  %v194_v2 = vrot.slane %v193_v58, 2 }
  0xb5   :  { %v211_v0 = vadd.f32 %v1065_v1, %v783_v10  ;;  %v217_v50 = vadd.f32 %v1066_v63, %v785_v11  ;;  %v223_v7 = vadd.f32 %v1067_v19, %v787_v12  ;;  %v229_v8 = vadd.f32 %v1068_v16, %v789_v13 }
  0xb6   :  { %v235_v9 = vadd.f32 %v1069_v29, %v791_v14  ;;  %v200_v5 = vrot.slane %v199_v21, 2  ;;  %v206_v22 = vrot.slane %v205_v48, 2  ;;  %v195_v26 = vadd.f32 %v194_v2, %v193_v58 }
  0xb7   :  { %v212_v10 = vrot.slane %v211_v0, 2  ;;  %v218_v15 = vrot.slane %v217_v50, 2  ;;  %v224_v24 = vrot.slane %v223_v7, 2  ;;  %v230_v25 = vrot.slane %v229_v8, 2 }
  0xb8   :  { %v236_v11 = vrot.slane %v235_v9, 2  ;;  %v201_v52 = vadd.f32 %v200_v5, %v199_v21  ;;  %v207_v23 = vadd.f32 %v206_v22, %v205_v48  ;;  %v196_v1 = vrot.slane %v195_v26, 1 }
  0xb9   :  { %v213_v12 = vadd.f32 %v212_v10, %v211_v0  ;;  %v219_v53 = vadd.f32 %v218_v15, %v217_v50  ;;  %v225_v59 = vadd.f32 %v224_v24, %v223_v7  ;;  %v231_v6 = vadd.f32 %v230_v25, %v229_v8 }
  0xba   :  { %v237_v13 = vadd.f32 %v236_v11, %v235_v9  ;;  %v202_v63 = vrot.slane %v201_v52, 1  ;;  %v208_v19 = vrot.slane %v207_v23, 1  ;;  %v197_v62 = vadd.f32 %v196_v1, %v195_v26 }
  0xbb   :  { %v214_v14 = vrot.slane %v213_v12, 1  ;;  %v220_v16 = vrot.slane %v219_v53, 1  ;;  %v226_v29 = vrot.slane %v225_v59, 1  ;;  %v232_v3 = vrot.slane %v231_v6, 1 }
  0xbc   :  { %v238_v44 = vrot.slane %v237_v13, 1  ;;  %v203_v61 = vadd.f32 %v202_v63, %v201_v52  ;;  %v209_v30 = vadd.f32 %v208_v19, %v207_v23  ;;  %v240_v50 = vadd.f32 %v197_v62, %v91_v57 }
  0xbd   :  { %v215_v60 = vadd.f32 %v214_v14, %v213_v12  ;;  %v221_v58 = vadd.f32 %v220_v16, %v219_v53  ;;  %v227_v21 = vadd.f32 %v226_v29, %v225_v59  ;;  %v233_v48 = vadd.f32 %v232_v3, %v231_v6 }
  0xbe   :  { %v239_v0 = vadd.f32 %v238_v44, %v237_v13  ;;  %v241_v7 = vadd.f32 %v203_v61, %v97_v54  ;;  %v242_v8 = vadd.f32 %v209_v30, %v103_v20  ;;  %v1070_v15 = vrot.slane %v843_v31, 4 }
  0xbf   :  { %v243_v9 = vadd.f32 %v215_v60, %v109_v55  ;;  %v244_v2 = vadd.f32 %v221_v58, %v115_v37  ;;  %v245_v5 = vadd.f32 %v227_v21, %v121_v56  ;;  %v246_v22 = vadd.f32 %v233_v48, %v127_v40 }
  0xc0   :  { %v247_v10 = vadd.f32 %v239_v0, %v133_v18  ;;  %v299_v24 = vadd.f32 %v1070_v15, %v843_v31  ;;  %v1071_v25 = vrot.slane %v845_v32, 4  ;;  %v1072_v3 = vrot.slane %v847_v33, 4 }
  0xc1   :  { %v1073_v30 = vrot.slane %v849_v34, 4  ;;  %v1074_v61 = vrot.slane %v851_v35, 4  ;;  %v1075_v57 = vrot.slane %v853_v36, 4  ;;  %v1076_v54 = vrot.slane %v855_v51, 4 }
  0xc2   :  { %v305_v11 = vadd.f32 %v1071_v25, %v845_v32  ;;  %v311_v44 = vadd.f32 %v1072_v3, %v847_v33  ;;  %v1077_v20 = vrot.slane %v857_v39, 4  ;;  %v300_v55 = vrot.slane %v299_v24, 2 }
  0xc3   :  { %v317_v60 = vadd.f32 %v1073_v30, %v849_v34  ;;  %v323_v62 = vadd.f32 %v1074_v61, %v851_v35  ;;  %v329_v31 = vadd.f32 %v1075_v57, %v853_v36  ;;  %v335_v32 = vadd.f32 %v1076_v54, %v855_v51 }
  0xc4   :  { %v341_v33 = vadd.f32 %v1077_v20, %v857_v39  ;;  %v306_v37 = vrot.slane %v305_v11, 2  ;;  %v312_v56 = vrot.slane %v311_v44, 2  ;;  %v301_v52 = vadd.f32 %v300_v55, %v299_v24 }
  0xc5   :  { %v318_v34 = vrot.slane %v317_v60, 2  ;;  %v324_v40 = vrot.slane %v323_v62, 2  ;;  %v330_v18 = vrot.slane %v329_v31, 2  ;;  %v336_v26 = vrot.slane %v335_v32, 2 }
  0xc6   :  { %v342_v35 = vrot.slane %v341_v33, 2  ;;  %v307_v23 = vadd.f32 %v306_v37, %v305_v11  ;;  %v313_v12 = vadd.f32 %v312_v56, %v311_v44  ;;  %v302_v13 = vrot.slane %v301_v52, 1 }
  0xc7   :  { %v319_v36 = vadd.f32 %v318_v34, %v317_v60  ;;  %v325_v53 = vadd.f32 %v324_v40, %v323_v62  ;;  %v331_v59 = vadd.f32 %v330_v18, %v329_v31  ;;  %v337_v6 = vadd.f32 %v336_v26, %v335_v32 }
  0xc8   :  { %v343_v51 = vadd.f32 %v342_v35, %v341_v33  ;;  %v308_v1 = vrot.slane %v307_v23, 1  ;;  %v314_v63 = vrot.slane %v313_v12, 1  ;;  %v303_v58 = vadd.f32 %v302_v13, %v301_v52 }
  0xc9   :  { %v320_v39 = vrot.slane %v319_v36, 1  ;;  %v326_v19 = vrot.slane %v325_v53, 1  ;;  %v332_v14 = vrot.slane %v331_v59, 1  ;;  %v338_v16 = vrot.slane %v337_v6, 1 }
  0xca   :  { %v344_v29 = vrot.slane %v343_v51, 1  ;;  %v309_v21 = vadd.f32 %v308_v1, %v307_v23  ;;  %v315_v48 = vadd.f32 %v314_v63, %v313_v12  ;;  %v346_v3 = vadd.f32 %v303_v58, %v240_v50 }
  0xcb   :  { %v321_v0 = vadd.f32 %v320_v39, %v319_v36  ;;  %v327_v15 = vadd.f32 %v326_v19, %v325_v53  ;;  %v333_v24 = vadd.f32 %v332_v14, %v331_v59  ;;  %v339_v25 = vadd.f32 %v338_v16, %v337_v6 }
  0xcc   :  { %v345_v11 = vadd.f32 %v344_v29, %v343_v51  ;;  %v347_v44 = vadd.f32 %v309_v21, %v241_v7  ;;  %v348_v30 = vadd.f32 %v315_v48, %v242_v8  ;;  %v1078_v54 = vrot.slane %v867_v49, 2 }
  0xcd   :  { %v349_v60 = vadd.f32 %v321_v0, %v243_v9  ;;  %v350_v61 = vadd.f32 %v327_v15, %v244_v2  ;;  %v351_v62 = vadd.f32 %v333_v24, %v245_v5  ;;  %v352_v57 = vadd.f32 %v339_v25, %v246_v22  ;;  %v1090_v15 = vld [vmem:[#allocation5_spill] sm:$0xff] }
  0xce   :  { %v353_v31 = vadd.f32 %v345_v11, %v247_v10  ;;  %v407_v32 = vadd.f32 %v1078_v54, %v867_v49  ;;  %v1079_v20 = vrot.slane %v869_v42, 2  ;;  %v1080_v55 = vrot.slane %v871_v41, 2  ;;  %v1092_v11 = vld [vmem:[#allocation6_spill] sm:$0xff] }
  0xcf   :  { %v1081_v50 = vrot.slane %v873_v47, 2  ;;  %v1082_v8 = vrot.slane %v875_v46, 2  ;;  %v1083_v2 = vrot.slane %v877_v45, 2  ;;  %v1084_v5 = vrot.slane %v879_v28, 2 }
  0xd0   :  { %v413_v33 = vadd.f32 %v1079_v20, %v869_v42  ;;  %v419_v37 = vadd.f32 %v1080_v55, %v871_v41  ;;  %v1085_v22 = vrot.slane %v881_v43, 2  ;;  %v408_v10 = vrot.slane %v407_v32, 1 }
  0xd1   :  { %v425_v7 = vadd.f32 %v1081_v50, %v873_v47  ;;  %v431_v9 = vadd.f32 %v1082_v8, %v875_v46  ;;  %v437_v49 = vadd.f32 %v1083_v2, %v877_v45  ;;  %v443_v42 = vadd.f32 %v1084_v5, %v879_v28 }
  0xd2   :  { %v449_v41 = vadd.f32 %v1085_v22, %v881_v43  ;;  %v414_v56 = vrot.slane %v413_v33, 1  ;;  %v420_v34 = vrot.slane %v419_v37, 1  ;;  %v409_v35 = vadd.f32 %v408_v10, %v407_v32 }
  0xd3   :  { %v426_v47 = vrot.slane %v425_v7, 1  ;;  %v432_v40 = vrot.slane %v431_v9, 1  ;;  %v438_v18 = vrot.slane %v437_v49, 1  ;;  %v444_v26 = vrot.slane %v443_v42, 1 }
  0xd4   :  { %v450_v46 = vrot.slane %v449_v41, 1  ;;  %v415_v52 = vadd.f32 %v414_v56, %v413_v33  ;;  %v421_v23 = vadd.f32 %v420_v34, %v419_v37  ;;  %v452_v59 = vadd.f32 %v409_v35, %v346_v3 }
  0xd5   :  { %v427_v45 = vadd.f32 %v426_v47, %v425_v7  ;;  %v433_v12 = vadd.f32 %v432_v40, %v431_v9  ;;  %v439_v36 = vadd.f32 %v438_v18, %v437_v49  ;;  %v445_v53 = vadd.f32 %v444_v26, %v443_v42 }
  0xd6   :  { %v451_v28 = vadd.f32 %v450_v46, %v449_v41  ;;  %v453_v6 = vadd.f32 %v415_v52, %v347_v44  ;;  %v454_v51 = vadd.f32 %v421_v23, %v348_v30  ;;  %v1086_v19 = vrot.slane %v907_v4, 4  ;;  %v1094_v44 = vld [vmem:[#allocation7_spill] sm:$0xff] }
  0xd7   :  { %v455_v43 = vadd.f32 %v427_v45, %v349_v60  ;;  %v456_v13 = vadd.f32 %v433_v12, %v350_v61  ;;  %v457_v1 = vadd.f32 %v439_v36, %v351_v62  ;;  %v458_v63 = vadd.f32 %v445_v53, %v352_v57  ;;  %v1096_v60 = vld [vmem:[#allocation8_spill] sm:$0xff] }
  0xd8   :  { %v459_v39 = vadd.f32 %v451_v28, %v353_v31  ;;  %v511_v14 = vadd.f32 %v1086_v19, %v907_v4  ;;  %v1087_v16 = vrot.slane %v909_v27, 4  ;;  %v1088_v58 = vrot.slane %v911_v38, 4 }
  0xd9   :  { %v1089_v48 = vrot.slane %v913_v17, 4  ;;  %v1091_v24 = vrot.slane %v1090_v15, 4  ;;  %v1093_v3 = vrot.slane %v1092_v11, 4  ;;  %v1095_v30 = vrot.slane %v1094_v44, 4 }
  0xda   :  { %v517_v29 = vadd.f32 %v1087_v16, %v909_v27  ;;  %v523_v21 = vadd.f32 %v1088_v58, %v911_v38  ;;  %v1097_v61 = vrot.slane %v1096_v60, 4  ;;  %v512_v62 = vrot.slane %v511_v14, 2 }
  0xdb   :  { %v529_v0 = vadd.f32 %v1089_v48, %v913_v17  ;;  %v535_v25 = vadd.f32 %v1091_v24, %v1090_v15  ;;  %v541_v4 = vadd.f32 %v1093_v3, %v1092_v11  ;;  %v547_v27 = vadd.f32 %v1095_v30, %v1094_v44 }
  0xdc   :  { %v553_v38 = vadd.f32 %v1097_v61, %v1096_v60  ;;  %v518_v57 = vrot.slane %v517_v29, 2  ;;  %v524_v31 = vrot.slane %v523_v21, 2  ;;  %v513_v55 = vadd.f32 %v512_v62, %v511_v14 }
  0xdd   :  { %v530_v17 = vrot.slane %v529_v0, 2  ;;  %v536_v54 = vrot.slane %v535_v25, 2  ;;  %v542_v32 = vrot.slane %v541_v4, 2  ;;  %v548_v20 = vrot.slane %v547_v27, 2 }
  0xde   :  { %v554_v33 = vrot.slane %v553_v38, 2  ;;  %v519_v37 = vadd.f32 %v518_v57, %v517_v29  ;;  %v525_v50 = vadd.f32 %v524_v31, %v523_v21  ;;  %v514_v5 = vrot.slane %v513_v55, 1 }
  0xdf   :  { %v531_v7 = vadd.f32 %v530_v17, %v529_v0  ;;  %v537_v8 = vadd.f32 %v536_v54, %v535_v25  ;;  %v543_v9 = vadd.f32 %v542_v32, %v541_v4  ;;  %v549_v2 = vadd.f32 %v548_v20, %v547_v27 }
  0xe0   :  { %v555_v49 = vadd.f32 %v554_v33, %v553_v38  ;;  %v520_v42 = vrot.slane %v519_v37, 1  ;;  %v526_v22 = vrot.slane %v525_v50, 1  ;;  %v515_v40 = vadd.f32 %v514_v5, %v513_v55 }
  0xe1   :  { %v532_v41 = vrot.slane %v531_v7, 1  ;;  %v538_v10 = vrot.slane %v537_v8, 1  ;;  %v544_v56 = vrot.slane %v543_v9, 1  ;;  %v550_v34 = vrot.slane %v549_v2, 1 }
  0xe2   :  { %v556_v47 = vrot.slane %v555_v49, 1  ;;  %v521_v18 = vadd.f32 %v520_v42, %v519_v37  ;;  %v527_v26 = vadd.f32 %v526_v22, %v525_v50  ;;  %v558_v12 = vadd.f32 %v515_v40, %v452_v59 }
  0xe3   :  { %v533_v46 = vadd.f32 %v532_v41, %v531_v7  ;;  %v539_v35 = vadd.f32 %v538_v10, %v537_v8  ;;  %v545_v52 = vadd.f32 %v544_v56, %v543_v9  ;;  %v551_v23 = vadd.f32 %v550_v34, %v549_v2 }
  0xe4   :  { %v557_v45 = vadd.f32 %v556_v47, %v555_v49  ;;  %v559_v36 = vadd.f32 %v521_v18, %v453_v6  ;;  %v560_v53 = vadd.f32 %v527_v26, %v454_v51 }
  0xe5   :  { %v561_v28 = vadd.f32 %v533_v46, %v455_v43  ;;  %v562_v19 = vadd.f32 %v539_v35, %v456_v13  ;;  %v563_v14 = vadd.f32 %v545_v52, %v457_v1  ;;  %v564_v16 = vadd.f32 %v551_v23, %v458_v63 }
  0xe6   :  { %v565_v29 = vadd.f32 %v557_v45, %v459_v39  ;;  %v574_v58 = vrot.slane %v559_v36, 7  ;;  %v575_v21 = vrot.slane %v560_v53, 6 }
  0xe7   :  { %v576_v48 = vrot.slane %v561_v28, 5  ;;  %v577_v0 = vrot.slane %v562_v19, 4  ;;  %v578_v15 = vrot.slane %v563_v14, 3  ;;  %v579_v24 = vrot.slane %v564_v16, 2 }
  0xe8   :  { %v580_v25 = vrot.slane %v565_v29, 1  ;;  %v582_v11 = vsel %vm581_vm0, %v558_v12, %v574_v58 }
  0xe9   :  { %v584_v59 = vsel %vm583_vm1, %v575_v21, %v576_v48  ;;  %v588_v6 = vsel %vm587_vm3, %v577_v0, %v578_v15 }
  0xea   :  { %v586_v51 = vsel %vm585_vm2, %v582_v11, %v584_v59  ;;  %v590_v43 = vsel %vm589_vm4, %v579_v24, %v580_v25 }
  0xeb   :  { %v592_v13 = vsel %vm591_vm5, %v588_v6, %v590_v43 }
  0xec   :  { %v594_v1 = vsel %vm593_vm6, %v586_v51, %v592_v13 }
  0xed   :  { %596 = vst [vmem:[#allocation2] sm:$0xff] %v594_v1 }
  0xee   :  { %607 = dma.vmem_to_hbm [thread:$0]  %s603_s2, 128, %s605_s21, [#allocation3]  }
  0xef   :  { %642 = dma.done.wait [#allocation3], 128  }
  0xf0   :  { %643 = vsyncadd [#allocation3], 4294967168 }
  0xf1   :  { %612 = vsyncpa [#allocation3], 1 }

</bundles_post_ra>
